<compile_context>
chip_gen: v6e
topology: v6e:2x2x1
jax: 0.10.0
libtpu: 0.0.40
codegen_flags: <defaults>
</compile_context>

<pallas_src>
import functools

import jax
import jax.numpy as jnp
from jax.experimental import pallas as pl
from jax.experimental.pallas import tpu as pltpu


def _round_up(x, m):
    return ((x + m - 1) // m) * m


def _wrapper_kernel(x_ref, wt_ref, b_ref, lo_ref, hi_ref, inf_ref, o_ref):
    # x tile: (TILE_B, H), bf16 in HBM; upcast to f32 only in VMEM (cheap VPU op).
    x = x_ref[...].astype(jnp.float32)

    # (O, H) contracted with (TILE_B, H) over H -> (O, TILE_B): batch lands on
    # the 128-lane axis, so the output store is lane-dense.  HIGHEST precision
    # keeps f32 parity with the reference (the MXU is ~idle here anyway).
    y = jax.lax.dot_general(
        wt_ref[...], x,
        dimension_numbers=(((1,), (1,)), ((), ())),
        preferred_element_type=jnp.float32,
        precision=jax.lax.Precision.HIGHEST,
    )
    y = y + b_ref[...]                                   # (O, TILE_B) + (O, 1)

    # torch.where(isnan(y), 0, y)
    y = jnp.where(jnp.isnan(y), 0.0, y)
    # torch.where(isinf(y), 3*std, y)  (sign-agnostic, as in the torch code)
    y = jnp.where(jnp.isinf(y), inf_ref[...], y)
    # torch.clamp(y, mean - 3*std, mean + 3*std)  (bounds hoisted to wrapper)
    y = jnp.clip(y, lo_ref[...], hi_ref[...])

    o_ref[...] = y.astype(o_ref.dtype)


@functools.partial(jax.jit, static_argnames=("tile_b",))
def model_wrapper_forward(x, w, b, means, stds, *, tile_b=8192):
    """Fused linear head + NaN/Inf correction + clamp.

    Returns a list of O corrected outputs, each of shape (B,) float32.
    """
    B, H = x.shape
    O = w.shape[1]

    means = jnp.asarray(means, jnp.float32).reshape(O, 1)
    stds = jnp.asarray(stds, jnp.float32).reshape(O, 1)
    lo = means - 3.0 * stds                      # clamp lower bound (hoisted)
    hi = means + 3.0 * stds                      # clamp upper bound (hoisted)
    inf_fill = 3.0 * stds                        # Inf replacement value
    b_col = jnp.asarray(b, jnp.float32).reshape(O, 1)
    w_t = jnp.asarray(w, jnp.float32).T          # (O, H): tiny, stays resident

    # Batch tile: multiple of 128 so the lane-dense (O, TILE_B) output block is
    # unmasked; default 8192 rows => double-buffered VMEM use ~1-2 MiB, far
    # under the 32 MiB scoped default and v7x's 64 MiB physical VMEM.
    tile_b = max(128, min(tile_b, _round_up(B, 128)))
    tile_b = _round_up(tile_b, 128)
    b_pad = _round_up(B, tile_b)
    if b_pad != B:
        x = jnp.pad(x, ((0, b_pad - B), (0, 0)))  # padded rows sliced off below

    grid = (b_pad // tile_b,)
    const = lambda i: (0, 0)                      # resident constant blocks

    # Memory-bound: advertise traffic (bf16 x read + f32 y write) and tiny FLOPs.
    cost = pl.CostEstimate(
        flops=2 * b_pad * H * O,
        transcendentals=0,
        bytes_accessed=b_pad * H * x.dtype.itemsize + O * b_pad * 4,
    )

    y = pl.pallas_call(
        _wrapper_kernel,
        out_shape=jax.ShapeDtypeStruct((O, b_pad), jnp.float32),
        grid=grid,
        in_specs=[
            pl.BlockSpec((tile_b, H), lambda i: (i, 0)),   # x: tiled over batch
            pl.BlockSpec((O, H), const),                   # W^T
            pl.BlockSpec((O, 1), const),                   # bias
            pl.BlockSpec((O, 1), const),                   # lo
            pl.BlockSpec((O, 1), const),                   # hi
            pl.BlockSpec((O, 1), const),                   # inf fill
        ],
        out_specs=pl.BlockSpec((O, tile_b), lambda i: (0, i)),
        compiler_params=pltpu.CompilerParams(
            dimension_semantics=("parallel",),             # megacore on v7x
        ),
        cost_estimate=cost,
    )(x, w_t, b_col, lo, hi, inf_fill)

    # Lane-dense output: each per-output slice is a contiguous row.
    return [y[i, :B] for i in range(O)]


if __name__ == "__main__":
    key = jax.random.PRNGKey(0)
    kx, kw, kb = jax.random.split(key, 3)

    B, H, O = 256, 32, 4
    # x in bf16: halves HBM read traffic on the memory-bound path.
    x = jax.random.normal(kx, (B, H), dtype=jnp.float32).astype(jnp.bfloat16)
    w = jax.random.normal(kw, (H, O), dtype=jnp.float32) * 0.1
    b = jax.random.normal(kb, (O,), dtype=jnp.float32) * 0.1
    # Poison one head's bias with +inf to exercise the Inf-correction path.
    b = b.at[3].set(jnp.inf)

    means = jnp.zeros((O,), jnp.float32)
    stds = jnp.ones((O,), jnp.float32)

    outs = model_wrapper_forward(x, w, b, means, stds, tile_b=128)  # grid = (2,)
    outs = [jax.block_until_ready(o) for o in outs]

    # Pure-JAX reference (same bf16 input, f32 math, highest-precision matmul).
    x32 = x.astype(jnp.float32)
    y_ref = jnp.dot(x32, w, precision=jax.lax.Precision.HIGHEST) + b[None, :]
    y_ref = jnp.where(jnp.isnan(y_ref), 0.0, y_ref)
    y_ref = jnp.where(jnp.isinf(y_ref), 3.0 * stds[None, :], y_ref)
    y_ref = jnp.clip(y_ref,
                     means[None, :] - 3.0 * stds[None, :],
                     means[None, :] + 3.0 * stds[None, :])

    for i in range(O):
        assert outs[i].shape == (B,)
        assert jnp.allclose(outs[i], y_ref[:, i], atol=1e-4), f"mismatch in output {i}"

    print("KERNEL_OK")
</pallas_src>

<mosaic_0001>
module attributes {stable_mosaic.version = 11 : i64} {
  func.func @_wrapper_kernel(%arg0: i32, %arg1: memref<128x32xbf16, #tpu.memory_space<vmem>>, %arg2: memref<4x32xf32, #tpu.memory_space<vmem>>, %arg3: memref<4x1xf32, #tpu.memory_space<vmem>>, %arg4: memref<4x1xf32, #tpu.memory_space<vmem>>, %arg5: memref<4x1xf32, #tpu.memory_space<vmem>>, %arg6: memref<4x1xf32, #tpu.memory_space<vmem>>, %arg7: memref<4x128xf32, #tpu.memory_space<vmem>>) attributes {dimension_semantics = [#tpu.dimension_semantics<parallel>], iteration_bounds = array<i64: 2>, scalar_prefetch = 0 : i64, scratch_operands = 0 : i64, tpu.core_type = #tpu.core_type<tc>, window_params = [{transform_indices = @transform_0, window_bounds = array<i64: 128, 32>}, {pipeline_mode = #tpu.pipeline_mode<synchronous>, transform_indices = @transform_1, window_bounds = array<i64: 4, 32>}, {pipeline_mode = #tpu.pipeline_mode<synchronous>, transform_indices = @transform_2, window_bounds = array<i64: 4, 1>}, {pipeline_mode = #tpu.pipeline_mode<synchronous>, transform_indices = @transform_3, window_bounds = array<i64: 4, 1>}, {pipeline_mode = #tpu.pipeline_mode<synchronous>, transform_indices = @transform_4, window_bounds = array<i64: 4, 1>}, {pipeline_mode = #tpu.pipeline_mode<synchronous>, transform_indices = @transform_5, window_bounds = array<i64: 4, 1>}, {transform_indices = @transform_6, window_bounds = array<i64: 4, 128>}]} {
    %c0 = arith.constant 0 : index
    %c0_0 = arith.constant 0 : index
    %0 = vector.load %arg1[%c0, %c0_0] : memref<128x32xbf16, #tpu.memory_space<vmem>>, vector<128x32xbf16>
    %1 = arith.extf %0 : vector<128x32xbf16> to vector<128x32xf32>
    %c0_1 = arith.constant 0 : index
    %c0_2 = arith.constant 0 : index
    %2 = vector.load %arg2[%c0_1, %c0_2] : memref<4x32xf32, #tpu.memory_space<vmem>>, vector<4x32xf32>
    %cst = arith.constant dense<0.000000e+00> : vector<4x128xf32>
    %3 = tpu.matmul %2, %1, %cst {dimension_numbers = #tpu.dot_dimension_numbers<[1], [1], [0], [0], [0, 0, 1, 0], [], []>, precision = #tpu.contract_precision<fp32>} : vector<4x32xf32>, vector<128x32xf32>, vector<4x128xf32> -> vector<4x128xf32>
    %c0_3 = arith.constant 0 : index
    %c0_4 = arith.constant 0 : index
    %4 = vector.load %arg3[%c0_3, %c0_4] : memref<4x1xf32, #tpu.memory_space<vmem>>, vector<4x1xf32>
    %5 = vector.broadcast %4 : vector<4x1xf32> to vector<4x128xf32>
    %6 = arith.addf %3, %5 : vector<4x128xf32>
    %7 = arith.cmpf one, %6, %6 : vector<4x128xf32>
    %cst_5 = arith.constant 0.000000e+00 : f32
    %8 = vector.broadcast %cst_5 : f32 to vector<4x128xf32>
    %9 = arith.select %7, %8, %6 : vector<4x128xi1>, vector<4x128xf32>
    %10 = math.absf %9 : vector<4x128xf32>
    %cst_6 = arith.constant 0x7F800000 : f32
    %11 = vector.broadcast %cst_6 : f32 to vector<4x128xf32>
    %12 = arith.cmpf oeq, %10, %11 : vector<4x128xf32>
    %c0_7 = arith.constant 0 : index
    %c0_8 = arith.constant 0 : index
    %13 = vector.load %arg6[%c0_7, %c0_8] : memref<4x1xf32, #tpu.memory_space<vmem>>, vector<4x1xf32>
    %14 = vector.shape_cast %13 : vector<4x1xf32> to vector<4x1xf32>
    %15 = vector.broadcast %14 : vector<4x1xf32> to vector<4x128xf32>
    %16 = arith.select %12, %15, %9 : vector<4x128xi1>, vector<4x128xf32>
    %c0_9 = arith.constant 0 : index
    %c0_10 = arith.constant 0 : index
    %17 = vector.load %arg4[%c0_9, %c0_10] : memref<4x1xf32, #tpu.memory_space<vmem>>, vector<4x1xf32>
    %c0_11 = arith.constant 0 : index
    %c0_12 = arith.constant 0 : index
    %18 = vector.load %arg5[%c0_11, %c0_12] : memref<4x1xf32, #tpu.memory_space<vmem>>, vector<4x1xf32>
    %19 = vector.broadcast %17 : vector<4x1xf32> to vector<4x128xf32>
    %20 = arith.maximumf %19, %16 : vector<4x128xf32>
    %21 = vector.broadcast %18 : vector<4x1xf32> to vector<4x128xf32>
    %22 = arith.minimumf %21, %20 : vector<4x128xf32>
    %c0_13 = arith.constant 0 : index
    %c0_14 = arith.constant 0 : index
    %23 = vector.load %arg7[%c0_13, %c0_14] : memref<4x128xf32, #tpu.memory_space<vmem>>, vector<4x128xf32>
    tpu.vector_store %arg7[%c0_13, %c0_14], %22 {strides = array<i32>} : memref<4x128xf32, #tpu.memory_space<vmem>>, vector<4x128xf32>,
    return
  }
  func.func @transform_0(%arg0: i32) -> (i32, i32) {
    %c0_i32 = arith.constant 0 : i32
    %c0_i32_0 = arith.constant 0 : i32
    return %arg0, %c0_i32 : i32, i32
  }
  func.func @transform_1(%arg0: i32) -> (i32, i32) {
    %c0_i32 = arith.constant 0 : i32
    %c0_i32_0 = arith.constant 0 : i32
    %c0_i32_1 = arith.constant 0 : i32
    return %c0_i32, %c0_i32_0 : i32, i32
  }
  func.func @transform_2(%arg0: i32) -> (i32, i32) {
    %c0_i32 = arith.constant 0 : i32
    %c0_i32_0 = arith.constant 0 : i32
    %c0_i32_1 = arith.constant 0 : i32
    return %c0_i32, %c0_i32_0 : i32, i32
  }
  func.func @transform_3(%arg0: i32) -> (i32, i32) {
    %c0_i32 = arith.constant 0 : i32
    %c0_i32_0 = arith.constant 0 : i32
    %c0_i32_1 = arith.constant 0 : i32
    return %c0_i32, %c0_i32_0 : i32, i32
  }
  func.func @transform_4(%arg0: i32) -> (i32, i32) {
    %c0_i32 = arith.constant 0 : i32
    %c0_i32_0 = arith.constant 0 : i32
    %c0_i32_1 = arith.constant 0 : i32
    return %c0_i32, %c0_i32_0 : i32, i32
  }
  func.func @transform_5(%arg0: i32) -> (i32, i32) {
    %c0_i32 = arith.constant 0 : i32
    %c0_i32_0 = arith.constant 0 : i32
    %c0_i32_1 = arith.constant 0 : i32
    return %c0_i32, %c0_i32_0 : i32, i32
  }
  func.func @transform_6(%arg0: i32) -> (i32, i32) {
    %c0_i32 = arith.constant 0 : i32
    %c0_i32_0 = arith.constant 0 : i32
    return %c0_i32, %arg0 : i32, i32
  }
}

</mosaic_0001>

<bundles_post_ra>
// kernel: model_wrapper_forward.1
= control target key start
LH: loop header
LB: loop body
LE: loop exit
PB: predicated region body
PF: predicated region fallthrough
CT: control target
= control target key end

     0   :  { %s1531_s21 = smov 0   ;;  %s2006_s0 = inlined_call_operand.vmem [shape: bf16[256,32], index: 0, kind: input, shape index: {}]   ;;  %s2007_s1 = inlined_call_operand.vmem [shape: f32[4,32], index: 1, kind: input, shape index: {}]   ;;  %s2008_s2 = inlined_call_operand.vmem [shape: f32[4,1], index: 2, kind: input, shape index: {}]   ;;  %s2009_s3 = inlined_call_operand.vmem [shape: f32[4,1], index: 3, kind: input, shape index: {}]   ;;  %s2010_s4 = inlined_call_operand.vmem [shape: f32[4,1], index: 4, kind: input, shape index: {}]   ;;  %s2011_s5 = inlined_call_operand.vmem [shape: f32[4,1], index: 5, kind: input, shape index: {}]   ;;  %s2012_s6 = inlined_call_operand.vmem [shape: f32[4,256], index: 6, kind: output, shape index: {}]  }
   0x1 LB: > { %s1537_s22 = sadd.s32 4294967295, %s1491_s21   ;;  %p1067_p0 = scmp.ge.s32.totalorder %s1491_s21, 1  ;;  %s1491_s21 = sphi %s1531_s21, %s16_s21  }
   0x2   : > { %p213_p1 = scmp.lt.s32.totalorder %s1491_s21, 3 }
   0x4   : > { %p214_p2 = pnand %p1067_p0, %p213_p1 }
   0x5   : > { %s1068_s23 = sshll.u32 (!%p214_p2), %s1537_s22, 4  ;;  %p248_p4 = scmp.lt.s32.totalorder (!%p214_p2), %s1537_s22, 1 }
   0x6   : > { %217 = sbr.rel (%p214_p2) target bundleno = 423 (0x1a7), region = 44  ;;  %p243_p3 = scmp.lt.s32.totalorder (!%p214_p2), %s1068_s23, 31 }
   0xb   : > { %v1493_v0 = vmov 0.0   ;;  %vm1494_vm0 = vmmov 0   ;;  %s2014_s23 = smov (!%p243_p3, %s1068_s23), 31  ;;  %vm291_vm1 = vcmask 261120   ;;  %v285_v45 = vld [vmem:[%s2008_s2] sm:$0xf] }
   0xc   : > { %1262 = vmatprep.subr.mxu0 %v1493_v0  ;;  %1297 = vmatprep.subr.mxu1 %v1493_v0  ;;  %s1069_s24 = sshll.u32 %s2014_s23, 2  ;;  %v1495_v46 = vmov 0   ;;  %s2016_s22 = smov (!%p248_p4, %s1537_s22), 1 }
   0xd   : > { %1294 = vmatprep.mubr.msk.f32.mxu0 %vm1494_vm0, %v1493_v0  ;;  %1329 = vmatprep.mubr.msk.f32.mxu1 %vm1494_vm0, %v1493_v0  ;;  %s1551_s27 = scalar_lea.vmem %s2006_s0, %s1069_s24  ;;  %s1070_s14 = sshll.u32 %s2016_s22, 2 }
   0xe   : > { %v1159_v1 = vld [vmem:[%s1551_s27 + $0x38] sm:$0xff]   ;;  %v1158_v2 = vld [vmem:[%s1551_s27 + $0x30] sm:$0xff]   ;;  %v1157_v7 = vld [vmem:[%s1551_s27 + $0x28] sm:$0xff]   ;;  %1483 = vset.pattern.permute.xlu0 %v1495_v46  ;;  %1484 = vset.pattern.permute.xlu1 %v1495_v46  ;;  %s251_s17 = scalar_lea.vmem %s2012_s6, %s1070_s14 }
   0xf   : > { %v1555_v3 = vunpack.c.h.bf16 %v1159_v1  ;;  %v1557_v4 = vunpack.c.l.bf16 %v1159_v1  ;;  %v1559_v5 = vunpack.c.h.bf16 %v1158_v2  ;;  %v1561_v6 = vunpack.c.l.bf16 %v1158_v2  ;;  %v1156_v25 = vld [vmem:[%s1551_s27 + $0x20] sm:$0xff]   ;;  %v1155_v38 = vld [vmem:[%s1551_s27 + $0x18] sm:$0xff]   ;;  %288 = vperm.xlu0 %1483, %v285_v45   ;;  %v1154_v53 = vld [vmem:[%s1551_s27 + $0x10] sm:$0xff]  }
  0x10   : > { %v1579_v14 = vunpack.c.h.bf16 %v1157_v7  ;;  %v1597_v22 = vunpack.c.l.bf16 %v1157_v7  ;;  %v1612_v30 = vunpack.c.h.bf16 %v1156_v25  ;;  %v1626_v36 = vunpack.c.l.bf16 %v1156_v25  ;;  %v1153_v7 = vld [vmem:[%s1551_s27 + $0x8] sm:$0xff]  }
  0x11   : > { %1263 = vmatpush3.xpose.msk.msra.mxu0 %vm291_vm1, %v1555_v3  ;;  %v341_v8 = vsel %vm291_vm1, %v1555_v3, 0  ;;  %v338_v9 = vsel %vm291_vm1, %v1557_v4, 0  ;;  %v335_v10 = vsel %vm291_vm1, %v1559_v5, 0  ;;  %v332_v15 = vsel %vm291_vm1, %v1561_v6, 0 }
  0x12   : > { %1264 = vmatprep.subr.mxu0 %v1493_v0  ;;  %v1573_v11 = vsub.f32 %v341_v8, %v341_v8  ;;  %v1575_v12 = vsub.f32 %v338_v9, %v338_v9  ;;  %v1577_v13 = vsub.f32 %v335_v10, %v335_v10  ;;  %v1595_v21 = vsub.f32 %v332_v15, %v332_v15 }
  0x13   : > { %v329_v23 = vsel %vm291_vm1, %v1579_v14, 0  ;;  %v326_v31 = vsel %vm291_vm1, %v1597_v22, 0  ;;  %v323_v37 = vsel %vm291_vm1, %v1612_v30, 0  ;;  %v1641_v43 = vunpack.c.h.bf16 %v1155_v38 }
  0x14   : > { %v437_v16 = vand.u32 4294901760, %v1573_v11  ;;  %v444_v17 = vand.u32 4294901760, %v1575_v12  ;;  %v451_v20 = vand.u32 4294901760, %v1577_v13  ;;  %v458_v28 = vand.u32 4294901760, %v1595_v21 }
  0x15   : > { %1265 = vmatpush3.xpose.msk.msra.mxu0 %vm291_vm1, %v1557_v4  ;;  %v1609_v29 = vsub.f32 %v329_v23, %v329_v23  ;;  %v1623_v35 = vsub.f32 %v326_v31, %v326_v31  ;;  %v1638_v42 = vsub.f32 %v323_v37, %v323_v37  ;;  %v320_v44 = vsel %vm291_vm1, %v1626_v36, 0 }
  0x16   : > { %1266 = vmatprep.subr.mxu0 %v1493_v0  ;;  %v438_v18 = vsub.f32 %v1573_v11, %v437_v16  ;;  %v445_v19 = vsub.f32 %v1575_v12, %v444_v17  ;;  %v452_v27 = vsub.f32 %v1577_v13, %v451_v20  ;;  %v459_v33 = vsub.f32 %v1595_v21, %v458_v28 }
  0x17   : > { %v465_v34 = vand.u32 4294901760, %v1609_v29  ;;  %v472_v41 = vand.u32 4294901760, %v1623_v35  ;;  %v479_v49 = vand.u32 4294901760, %v1638_v42  ;;  %v1655_v50 = vsub.f32 %v320_v44, %v320_v44 }
  0x18   : > { %v439_v24 = vand.u32 4294901760, %v438_v18  ;;  %v446_v26 = vand.u32 4294901760, %v445_v19  ;;  %v453_v32 = vand.u32 4294901760, %v452_v27  ;;  %v460_v39 = vand.u32 4294901760, %v459_v33  ;;  %v284_v27 = vld [vmem:[%s2007_s1] sm:$0xf] }
  0x19   : > { %1267 = vmatpush3.xpose.msk.msra.mxu0 %vm291_vm1, %v1559_v5  ;;  %v466_v40 = vsub.f32 %v1609_v29, %v465_v34  ;;  %v473_v48 = vsub.f32 %v1623_v35, %v472_v41  ;;  %v1658_v51 = vunpack.c.l.bf16 %v1155_v38  ;;  %v317_v52 = vsel %vm291_vm1, %v1641_v43, 0  ;;  %v1122_v33 = vld [vmem:[%s1551_s27] sm:$0xff]  }
  0x1a   : > { %1298 = vmatpush3.xpose.msra.mxu1 %v439_v24  ;;  %1268 = vmatprep.subr.mxu0 %v1493_v0  ;;  %v480_v55 = vsub.f32 %v1638_v42, %v479_v49  ;;  %v486_v56 = vand.u32 4294901760, %v1655_v50  ;;  %v1670_v57 = vsub.f32 %v317_v52, %v317_v52  ;;  %v1673_v58 = vunpack.c.h.bf16 %v1154_v53 }
  0x1b   : > { %1299 = vmatprep.subr.mxu1 %v1493_v0  ;;  %v467_v47 = vand.u32 4294901760, %v466_v40  ;;  %v474_v54 = vand.u32 4294901760, %v473_v48  ;;  %v314_v59 = vsel %vm291_vm1, %v1658_v51, 0  ;;  %v1687_v1 = vunpack.c.l.bf16 %v1154_v53 }
  0x1c   : > { %v481_v60 = vand.u32 4294901760, %v480_v55  ;;  %v487_v61 = vsub.f32 %v1655_v50, %v486_v56  ;;  %v493_v62 = vand.u32 4294901760, %v1670_v57  ;;  %v1684_v63 = vsub.f32 %v314_v59, %v314_v59 }
  0x1d   : > { %1269 = vmatpush3.xpose.msk.msra.mxu0 %vm291_vm1, %v1561_v6  ;;  %v311_v2 = vsel %vm291_vm1, %v1673_v58, 0  ;;  %v1702_v18 = vunpack.c.h.bf16 %v1153_v7  ;;  %v308_v19 = vsel %vm291_vm1, %v1687_v1, 0  ;;  %v1719_v31 = vunpack.c.l.bf16 %v1153_v7 }
  0x1e   : > { %1300 = vmatpush3.xpose.msra.mxu1 %v446_v26  ;;  %1270 = vmatprep.subr.mxu0 %v1493_v0  ;;  %v488_v8 = vand.u32 4294901760, %v487_v61  ;;  %v494_v9 = vsub.f32 %v1670_v57, %v493_v62  ;;  %v500_v10 = vand.u32 4294901760, %v1684_v63  ;;  %v1699_v15 = vsub.f32 %v311_v2, %v311_v2 }
  0x1f   : > { %1301 = vmatprep.subr.mxu1 %v1493_v0  ;;  %v1713_v26 = vsub.f32 %v308_v19, %v308_v19  ;;  %v293_v37 = vsel %vm291_vm1, %v284_v27, 0  ;;  %v1735_v45 = vunpack.c.h.bf16 %v1122_v33  ;;  %v302_v46 = vsel %vm291_vm1, %v1719_v31, 0 }
  0x20   : > { %v495_v23 = vand.u32 4294901760, %v494_v9  ;;  %v501_v24 = vsub.f32 %v1684_v63, %v500_v10  ;;  %v507_v25 = vand.u32 4294901760, %v1699_v15  ;;  %v1751_v55 = vunpack.c.l.bf16 %v1122_v33 }
  0x21   : > { %1271 = vmatpush3.xpose.msk.msra.mxu0 %vm291_vm1, %v1579_v14  ;;  %v514_v40 = vand.u32 4294901760, %v1713_v26  ;;  %v299_v59 = vsel %vm291_vm1, %v1735_v45, 0 }
  0x22   : > { %1302 = vmatpush3.xpose.msra.mxu1 %v453_v32  ;;  %1272 = vmatprep.subr.mxu0 %v1493_v0  ;;  %v305_v32 = vsel %vm291_vm1, %v1702_v18, 0  ;;  %v502_v38 = vand.u32 4294901760, %v501_v24  ;;  %v296_v9 = vsel %vm291_vm1, %v1751_v55, 0 }
  0x23   : > { %1303 = vmatprep.subr.mxu1 %v1493_v0  ;;  %v1732_v44 = vsub.f32 %v305_v32, %v305_v32  ;;  %v515_v52 = vsub.f32 %v1713_v26, %v514_v40  ;;  %v1778_v32 = vsub.f32 %v296_v9, %v296_v9 }
  0x25   : > { %1273 = vmatpush3.xpose.msk.msra.mxu0 %vm291_vm1, %v1597_v22  ;;  %v521_v53 = vand.u32 4294901760, %v1732_v44  ;;  %v516_v61 = vand.u32 4294901760, %v515_v52 }
  0x26   : > { %1304 = vmatpush3.xpose.msra.mxu1 %v460_v39  ;;  %1274 = vmatprep.subr.mxu0 %v1493_v0  ;;  %v508_v39 = vsub.f32 %v1699_v15, %v507_v25 }
  0x27   : > { %1305 = vmatprep.subr.mxu1 %v1493_v0  ;;  %v522_v2 = vsub.f32 %v1732_v44, %v521_v53 }
  0x28   : > { %v509_v48 = vand.u32 4294901760, %v508_v39  ;;  %v542_v39 = vand.u32 4294901760, %v1778_v32 }
  0x29   : > { %1275 = vmatpush3.xpose.msk.msra.mxu0 %vm291_vm1, %v1612_v30 }
  0x2a   : > { %1306 = vmatpush3.xpose.msra.mxu1 %v467_v47  ;;  %1276 = vmatprep.subr.mxu0 %v1493_v0  ;;  %v1739_v47 = vand.u32 4294901760, %v293_v37  ;;  %v543_v52 = vsub.f32 %v1778_v32, %v542_v39 }
  0x2b   : > { %1307 = vmatprep.subr.mxu1 %v1493_v0 }
  0x2d   : > { %1277 = vmatpush3.xpose.msk.msra.mxu0 %vm291_vm1, %v1626_v36 }
  0x2e   : > { %1308 = vmatpush3.xpose.msra.mxu1 %v474_v54  ;;  %1278 = vmatprep.subr.mxu0 %v1493_v0  ;;  %v1748_v54 = vsub.f32 %v302_v46, %v302_v46 }
  0x2f   : > { %1309 = vmatprep.subr.mxu1 %v1493_v0 }
  0x30   : > { %v528_v7 = vand.u32 4294901760, %v1748_v54 }
  0x31   : > { %1279 = vmatpush3.xpose.msk.msra.mxu0 %vm291_vm1, %v1641_v43 }
  0x32   : > { %1310 = vmatpush3.xpose.msra.mxu1 %v481_v60  ;;  %1280 = vmatprep.subr.mxu0 %v1493_v0  ;;  %v1756_v60 = vsub.f32 %v293_v37, %v1739_v47  ;;  %v529_v24 = vsub.f32 %v1748_v54, %v528_v7 }
  0x33   : > { %1311 = vmatprep.subr.mxu1 %v1493_v0 }
  0x34   : > { %v426_v19 = vand.u32 4294901760, %v1756_v60  ;;  %v530_v37 = vand.u32 4294901760, %v529_v24 }
  0x35   : > { %1281 = vmatpush3.xpose.msk.msra.mxu0 %vm291_vm1, %v1658_v51 }
  0x36   : > { %1312 = vmatpush3.xpose.msra.mxu1 %v488_v8  ;;  %1282 = vmatprep.subr.mxu0 %v1493_v0  ;;  %v1765_v8 = vsub.f32 %v299_v59, %v299_v59  ;;  %v427_v33 = vsub.f32 %v1756_v60, %v426_v19  ;;  %v544_v59 = vand.u32 4294901760, %v543_v52 }
  0x37   : > { %1313 = vmatprep.subr.mxu1 %v1493_v0 }
  0x38   : > { %v535_v27 = vand.u32 4294901760, %v1765_v8  ;;  %v428_v46 = vand.u32 4294901760, %v427_v33 }
  0x39   : > { %1283 = vmatpush3.xpose.msk.msra.mxu0 %vm291_vm1, %v1673_v58 }
  0x3a   : > { %1314 = vmatpush3.xpose.msra.mxu1 %v495_v23  ;;  %1284 = vmatprep.subr.mxu0 %v1493_v0  ;;  %v523_v23 = vand.u32 4294901760, %v522_v2 }
  0x3b   : > { %1315 = vmatprep.subr.mxu1 %v1493_v0 }
  0x3d   : > { %1285 = vmatpush3.xpose.msk.msra.mxu0 %vm291_vm1, %v1687_v1 }
  0x3e   : > { %1316 = vmatpush3.xpose.msra.mxu1 %v502_v38  ;;  %1286 = vmatprep.subr.mxu0 %v1493_v0  ;;  %v536_v38 = vsub.f32 %v1765_v8, %v535_v27 }
  0x3f   : > { %1317 = vmatprep.subr.mxu1 %v1493_v0 }
  0x41   : > { %1287 = vmatpush3.xpose.msk.msra.mxu0 %vm291_vm1, %v1702_v18 }
  0x42   : > { %1318 = vmatpush3.xpose.msra.mxu1 %v509_v48  ;;  %1288 = vmatprep.subr.mxu0 %v1493_v0  ;;  %v537_v48 = vand.u32 4294901760, %v536_v38 }
  0x43   : > { %1319 = vmatprep.subr.mxu1 %v1493_v0 }
  0x45   : > { %1289 = vmatpush3.xpose.msk.msra.mxu0 %vm291_vm1, %v1719_v31 }
  0x46   : > { %1320 = vmatpush3.xpose.msra.mxu1 %v516_v61  ;;  %1290 = vmatprep.subr.mxu0 %v1493_v0  ;;  %v988_v61 = vld [vmem:[%s2011_s5] sm:$0xf] }
  0x47   : > { %1321 = vmatprep.subr.mxu1 %v1493_v0  ;;  %991 = vperm.xlu0 %1483, %v988_v61  }
  0x49   : > { %1291 = vmatpush3.xpose.msk.msra.mxu0 %vm291_vm1, %v1735_v45 }
  0x4a   : > { %1322 = vmatpush3.xpose.msra.mxu1 %v523_v23  ;;  %1292 = vmatprep.subr.mxu0 %v1493_v0 }
  0x4b   : > { %1323 = vmatprep.subr.mxu1 %v1493_v0 }
  0x4d   : > { %1293 = vmatpush3.xpose.msk.msra.mxu0 %vm291_vm1, %v1751_v55 }
  0x4e   : > { %1324 = vmatpush3.xpose.msra.mxu1 %v530_v37  ;;  %1332 = vmatprep.subr.mxu0 %v1493_v0 }
  0x4f   : > { %1325 = vmatprep.subr.mxu1 %v1493_v0 }
  0x50   : > { %1295 = vmatmul.mubr.f32.vlgmr.msra.gmra.mxu0 %v428_v46 }
  0x51   : > { %1333 = vmatpush3.xpose.msra.mxu0 %v1573_v11  ;;  %1364 = vmatprep.mubr.msk.f32.mxu0 %vm1494_vm0, %v1493_v0  ;;  %v995_v11 = vld [vmem:[%s2009_s3] sm:$0xf] }
  0x52   : > { %1326 = vmatpush3.xpose.msra.mxu1 %v537_v48  ;;  %1334 = vmatprep.subr.mxu0 %v1493_v0 }
  0x53   : > { %1327 = vmatprep.subr.mxu1 %v1493_v0  ;;  %999 = vperm.xlu1 %1484, %v995_v11  }
  0x55   : > { %1335 = vmatpush3.xpose.msra.mxu0 %v1575_v12  ;;  %v996_v12 = vld [vmem:[%s2010_s4] sm:$0xf] }
  0x56   : > { %1328 = vmatpush3.xpose.msra.mxu1 %v544_v59  ;;  %1336 = vmatprep.subr.mxu0 %v1493_v0 }
  0x57   : > { %1367 = vmatprep.subr.mxu1 %v1493_v0  ;;  %1005 = vperm.xlu1 %1484, %v996_v12  }
  0x59   : > { %1330 = vmatmul.mubr.f32.vlgmr.msra.gmra.mxu1 %v1739_v47  ;;  %1337 = vmatpush3.xpose.msra.mxu0 %v1577_v13 }
  0x5a   : > { %1368 = vmatpush3.xpose.msk.msra.mxu1 %vm291_vm1, %v1555_v3  ;;  %1338 = vmatprep.subr.mxu0 %v1493_v0 }
  0x5b   : > { %1369 = vmatprep.subr.mxu1 %v1493_v0  ;;  %1399 = vmatprep.mubr.msk.f32.mxu1 %vm1494_vm0, %v1493_v0 }
  0x5d   : > { %1339 = vmatpush3.xpose.msra.mxu0 %v1595_v21 }
  0x5e   : > { %1370 = vmatpush3.xpose.msk.msra.mxu1 %vm291_vm1, %v1557_v4  ;;  %1340 = vmatprep.subr.mxu0 %v1493_v0 }
  0x5f   : > { %1371 = vmatprep.subr.mxu1 %v1493_v0 }
  0x61   : > { %1341 = vmatpush3.xpose.msra.mxu0 %v1609_v29 }
  0x62   : > { %1372 = vmatpush3.xpose.msk.msra.mxu1 %vm291_vm1, %v1559_v5  ;;  %1342 = vmatprep.subr.mxu0 %v1493_v0 }
  0x63   : > { %1373 = vmatprep.subr.mxu1 %v1493_v0 }
  0x65   : > { %1343 = vmatpush3.xpose.msra.mxu0 %v1623_v35 }
  0x66   : > { %1374 = vmatpush3.xpose.msk.msra.mxu1 %vm291_vm1, %v1561_v6  ;;  %1344 = vmatprep.subr.mxu0 %v1493_v0 }
  0x67   : > { %1375 = vmatprep.subr.mxu1 %v1493_v0 }
  0x69   : > { %1345 = vmatpush3.xpose.msra.mxu0 %v1638_v42 }
  0x6a   : > { %1376 = vmatpush3.xpose.msk.msra.mxu1 %vm291_vm1, %v1579_v14  ;;  %1346 = vmatprep.subr.mxu0 %v1493_v0 }
  0x6b   : > { %1377 = vmatprep.subr.mxu1 %v1493_v0 }
  0x6d   : > { %1347 = vmatpush3.xpose.msra.mxu0 %v1655_v50 }
  0x6e   : > { %1378 = vmatpush3.xpose.msk.msra.mxu1 %vm291_vm1, %v1597_v22  ;;  %1348 = vmatprep.subr.mxu0 %v1493_v0 }
  0x6f   : > { %1379 = vmatprep.subr.mxu1 %v1493_v0 }
  0x71   : > { %1349 = vmatpush3.xpose.msra.mxu0 %v1670_v57 }
  0x72   : > { %1380 = vmatpush3.xpose.msk.msra.mxu1 %vm291_vm1, %v1612_v30  ;;  %1350 = vmatprep.subr.mxu0 %v1493_v0 }
  0x73   : > { %1381 = vmatprep.subr.mxu1 %v1493_v0 }
  0x75   : > { %1351 = vmatpush3.xpose.msra.mxu0 %v1684_v63 }
  0x76   : > { %1382 = vmatpush3.xpose.msk.msra.mxu1 %vm291_vm1, %v1626_v36  ;;  %1352 = vmatprep.subr.mxu0 %v1493_v0 }
  0x77   : > { %1383 = vmatprep.subr.mxu1 %v1493_v0 }
  0x79   : > { %1353 = vmatpush3.xpose.msra.mxu0 %v1699_v15 }
  0x7a   : > { %1384 = vmatpush3.xpose.msk.msra.mxu1 %vm291_vm1, %v1641_v43  ;;  %1354 = vmatprep.subr.mxu0 %v1493_v0 }
  0x7b   : > { %1385 = vmatprep.subr.mxu1 %v1493_v0 }
  0x7d   : > { %1355 = vmatpush3.xpose.msra.mxu0 %v1713_v26 }
  0x7e   : > { %1386 = vmatpush3.xpose.msk.msra.mxu1 %vm291_vm1, %v1658_v51  ;;  %1356 = vmatprep.subr.mxu0 %v1493_v0 }
  0x7f   : > { %1387 = vmatprep.subr.mxu1 %v1493_v0 }
  0x81   : > { %1357 = vmatpush3.xpose.msra.mxu0 %v1732_v44 }
  0x82   : > { %1388 = vmatpush3.xpose.msk.msra.mxu1 %vm291_vm1, %v1673_v58  ;;  %1358 = vmatprep.subr.mxu0 %v1493_v0 }
  0x83   : > { %1389 = vmatprep.subr.mxu1 %v1493_v0 }
  0x85   : > { %1359 = vmatpush3.xpose.msra.mxu0 %v1748_v54 }
  0x86   : > { %1390 = vmatpush3.xpose.msk.msra.mxu1 %vm291_vm1, %v1687_v1  ;;  %1360 = vmatprep.subr.mxu0 %v1493_v0 }
  0x87   : > { %1391 = vmatprep.subr.mxu1 %v1493_v0 }
  0x89   : > { %1361 = vmatpush3.xpose.msra.mxu0 %v1765_v8 }
  0x8a   : > { %1392 = vmatpush3.xpose.msk.msra.mxu1 %vm291_vm1, %v1702_v18  ;;  %1362 = vmatprep.subr.mxu0 %v1493_v0 }
  0x8b   : > { %1393 = vmatprep.subr.mxu1 %v1493_v0 }
  0x8d   : > { %1363 = vmatpush3.xpose.msra.mxu0 %v1778_v32 }
  0x8e   : > { %1394 = vmatpush3.xpose.msk.msra.mxu1 %vm291_vm1, %v1719_v31  ;;  %1402 = vmatprep.subr.mxu0 %v1493_v0 }
  0x8f   : > { %1395 = vmatprep.subr.mxu1 %v1493_v0 }
  0x90   : > { %1365 = vmatmul.mubr.f32.vlgmr.msra.gmra.mxu0 %v1756_v60 }
  0x91   : > { %1403 = vmatpush3.xpose.msra.mxu0 %v437_v16  ;;  %1434 = vmatprep.mubr.msk.f32.mxu0 %vm1494_vm0, %v1493_v0 }
  0x92   : > { %1396 = vmatpush3.xpose.msk.msra.mxu1 %vm291_vm1, %v1735_v45  ;;  %1404 = vmatprep.subr.mxu0 %v1493_v0 }
  0x93   : > { %1397 = vmatprep.subr.mxu1 %v1493_v0 }
  0x95   : > { %1405 = vmatpush3.xpose.msra.mxu0 %v444_v17 }
  0x96   : > { %1398 = vmatpush3.xpose.msk.msra.mxu1 %vm291_vm1, %v1751_v55  ;;  %1406 = vmatprep.subr.mxu0 %v1493_v0 }
  0x97   : > { %1437 = vmatprep.subr.mxu1 %v1493_v0 }
  0x99   : > { %1400 = vmatmul.mubr.f32.vlgmr.msra.gmra.mxu1 %v426_v19  ;;  %1407 = vmatpush3.xpose.msra.mxu0 %v451_v20 }
  0x9a   : > { %1438 = vmatpush3.xpose.msk.msra.mxu1 %vm291_vm1, %v1555_v3  ;;  %1408 = vmatprep.subr.mxu0 %v1493_v0 }
  0x9b   : > { %1439 = vmatprep.subr.mxu1 %v1493_v0  ;;  %1469 = vmatprep.mubr.msk.f32.mxu1 %vm1494_vm0, %v1493_v0 }
  0x9d   : > { %1409 = vmatpush3.xpose.msra.mxu0 %v458_v28 }
  0x9e   : > { %1440 = vmatpush3.xpose.msk.msra.mxu1 %vm291_vm1, %v1557_v4  ;;  %1410 = vmatprep.subr.mxu0 %v1493_v0 }
  0x9f   : > { %1441 = vmatprep.subr.mxu1 %v1493_v0 }
  0xa1   : > { %1411 = vmatpush3.xpose.msra.mxu0 %v465_v34 }
  0xa2   : > { %1442 = vmatpush3.xpose.msk.msra.mxu1 %vm291_vm1, %v1559_v5  ;;  %1412 = vmatprep.subr.mxu0 %v1493_v0  ;;  %v289_v5 = vpop.permute.xlu0 %288 }
  0xa3   : > { %1443 = vmatprep.subr.mxu1 %v1493_v0 }
  0xa5   : > { %1413 = vmatpush3.xpose.msra.mxu0 %v472_v41 }
  0xa6   : > { %1444 = vmatpush3.xpose.msk.msra.mxu1 %vm291_vm1, %v1561_v6  ;;  %1414 = vmatprep.subr.mxu0 %v1493_v0 }
  0xa7   : > { %1445 = vmatprep.subr.mxu1 %v1493_v0 }
  0xa9   : > { %1415 = vmatpush3.xpose.msra.mxu0 %v479_v49 }
  0xaa   : > { %1446 = vmatpush3.xpose.msk.msra.mxu1 %vm291_vm1, %v1579_v14  ;;  %1416 = vmatprep.subr.mxu0 %v1493_v0 }
  0xab   : > { %1447 = vmatprep.subr.mxu1 %v1493_v0 }
  0xad   : > { %1417 = vmatpush3.xpose.msra.mxu0 %v486_v56 }
  0xae   : > { %1448 = vmatpush3.xpose.msk.msra.mxu1 %vm291_vm1, %v1597_v22  ;;  %1418 = vmatprep.subr.mxu0 %v1493_v0 }
  0xaf   : > { %1449 = vmatprep.subr.mxu1 %v1493_v0 }
  0xb1   : > { %1419 = vmatpush3.xpose.msra.mxu0 %v493_v62 }
  0xb2   : > { %1450 = vmatpush3.xpose.msk.msra.mxu1 %vm291_vm1, %v1612_v30  ;;  %1420 = vmatprep.subr.mxu0 %v1493_v0 }
  0xb3   : > { %1451 = vmatprep.subr.mxu1 %v1493_v0 }
  0xb5   : > { %1421 = vmatpush3.xpose.msra.mxu0 %v500_v10 }
  0xb6   : > { %1452 = vmatpush3.xpose.msk.msra.mxu1 %vm291_vm1, %v1626_v36  ;;  %1422 = vmatprep.subr.mxu0 %v1493_v0 }
  0xb7   : > { %1453 = vmatprep.subr.mxu1 %v1493_v0 }
  0xb9   : > { %1423 = vmatpush3.xpose.msra.mxu0 %v507_v25 }
  0xba   : > { %1454 = vmatpush3.xpose.msk.msra.mxu1 %vm291_vm1, %v1641_v43  ;;  %1424 = vmatprep.subr.mxu0 %v1493_v0 }
  0xbb   : > { %1455 = vmatprep.subr.mxu1 %v1493_v0 }
  0xbd   : > { %1425 = vmatpush3.xpose.msra.mxu0 %v514_v40 }
  0xbe   : > { %1456 = vmatpush3.xpose.msk.msra.mxu1 %vm291_vm1, %v1658_v51  ;;  %1426 = vmatprep.subr.mxu0 %v1493_v0 }
  0xbf   : > { %1457 = vmatprep.subr.mxu1 %v1493_v0 }
  0xc1   : > { %1427 = vmatpush3.xpose.msra.mxu0 %v521_v53 }
  0xc2   : > { %1458 = vmatpush3.xpose.msk.msra.mxu1 %vm291_vm1, %v1673_v58  ;;  %1428 = vmatprep.subr.mxu0 %v1493_v0  ;;  %v992_v50 = vpop.permute.xlu0 %991 }
  0xc3   : > { %1459 = vmatprep.subr.mxu1 %v1493_v0 }
  0xc5   : > { %1429 = vmatpush3.xpose.msra.mxu0 %v528_v7 }
  0xc6   : > { %1460 = vmatpush3.xpose.msk.msra.mxu1 %vm291_vm1, %v1687_v1  ;;  %1430 = vmatprep.subr.mxu0 %v1493_v0 }
  0xc7   : > { %1461 = vmatprep.subr.mxu1 %v1493_v0 }
  0xc9   : > { %1431 = vmatpush3.xpose.msra.mxu0 %v535_v27 }
  0xca   : > { %1462 = vmatpush3.xpose.msk.msra.mxu1 %vm291_vm1, %v1702_v18  ;;  %1432 = vmatprep.subr.mxu0 %v1493_v0 }
  0xcb   : > { %1463 = vmatprep.subr.mxu1 %v1493_v0 }
  0xcd   : > { %1433 = vmatpush3.xpose.msra.mxu0 %v542_v39 }
  0xce   : > { %1464 = vmatpush3.xpose.msk.msra.mxu1 %vm291_vm1, %v1719_v31  ;;  %v1000_v43 = vpop.permute.xlu1 %999 }
  0xcf   : > { %1465 = vmatprep.subr.mxu1 %v1493_v0 }
  0xd0   : > { %1435 = vmatmul.mubr.f32.vlgmr.msra.gmra.mxu0 %v1739_v47 }
  0xd2   : > { %1466 = vmatpush3.xpose.msk.msra.mxu1 %vm291_vm1, %v1735_v45  ;;  %v1006_v57 = vpop.permute.xlu1 %1005 }
  0xd3   : > { %1467 = vmatprep.subr.mxu1 %v1493_v0 }
  0xd6   : > { %1468 = vmatpush3.xpose.msk.msra.mxu1 %vm291_vm1, %v1751_v55 }
  0xd9   : > { %1470 = vmatmul.mubr.f32.vlgmr.msra.gmra.mxu1 %v1739_v47 }
 0x110   : > { %v430_v3 = vpop.f32.mrf.mxu0 }
 0x111   : > { %v431_v6 = vadd.f32 %v430_v3, %v289_v5 }
 0x112   : > { %v1296_v4 = vpop.f32.mrf.mxu0 }
 0x119   : > { %v581_v13 = vpop.f32.mrf.mxu1 }
 0x11a   : > { %v582_v14 = vadd.f32 %v581_v13, %v431_v6 }
 0x11b   : > { %v1331_v16 = vpop.f32.mrf.mxu1 }
 0x150   : > { %v685_v17 = vpop.f32.mrf.mxu0 }
 0x151   : > { %v686_v20 = vadd.f32 %v685_v17, %v582_v14 }
 0x152   : > { %v1366_v21 = vpop.f32.mrf.mxu0 }
 0x159   : > { %v774_v22 = vpop.f32.mrf.mxu1 }
 0x15a   : > { %v775_v30 = vadd.f32 %v774_v22, %v686_v20 }
 0x15b   : > { %v1401_v28 = vpop.f32.mrf.mxu1 }
 0x190   : > { %v893_v0 = vpop.f32.mrf.mxu0 }
 0x191   : > { %v894_v34 = vadd.f32 %v893_v0, %v775_v30 }
 0x192   : > { %v1436_v29 = vpop.f32.mrf.mxu0 }
 0x199   : > { %v980_v35 = vpop.f32.mrf.mxu1 }
 0x19a   : > { %v981_v36 = vadd.f32 %v980_v35, %v894_v34 }
 0x19b   : > { %v1471_v41 = vpop.f32.mrf.mxu1 }
 0x19c   : > { %vm984_vm2 = vcmp.ne.f32.partialorder %v981_v36, %v981_v36 }
 0x19d   : > { %v985_v42 = vsel %vm984_vm2, 0.0, %v981_v36 }
 0x19e   : > { %v986_v49 = vand.u32 2147483647, %v985_v42 }
 0x1a0   : > { %vm987_vm3 = vcmp.eq.f32.partialorder %v986_v49, inf }
 0x1a1   : > { %v994_v51 = vsel %vm987_vm3, %v992_v50, %v985_v42 }
 0x1a2   : > { %v1002_v56 = vmax.f32 %v1000_v43, %v994_v51 }
 0x1a4   : > { %v1008_v58 = vmin.f32 %v1006_v57, %v1002_v56 }
 0x1a6   : > { %1009 = vst [vmem:[%s251_s17] sm:$0xf] %v1008_v58 }
 0x1a7 PF: > { %s16_s21 = sadd.s32 1, %s1491_s21  }
 0x1a8   : > { %p13_p5 = scmp.ge.s32.totalorder %s16_s21, 4  }
 0x1aa   :  { %15 = sbr.rel (!%p13_p5) target bundleno = 1 (0x1), region = 74 }

</bundles_post_ra>
